<compile_context>
chip_gen: v5e
topology: v5e:2x2
jax: 0.10.0
libtpu: 0.0.40
codegen_flags: <defaults>
</compile_context>

<pallas_src>
import jax
import jax.numpy as jnp
from jax.experimental import pallas as pl
from jax.experimental.pallas import tpu as pltpu

D_MODEL = 128     # layer.size
N_LAYERS = 2      # N
EPS = 1e-6        # RMSNorm eps


def _round_up(x, m):
    return ((x + m - 1) // m) * m


# ----------------------------- fused kernel ---------------------------------

def _encoder_kernel(x_ref, w_ref, b_ref, scale_ref, o_ref):
    """Fused: x -> [x = x + x @ W + b] * N_LAYERS -> RMSNorm(x) * scale."""
    x = x_ref[...].astype(jnp.float32)
    w = w_ref[...].astype(jnp.float32)
    b = b_ref[...].astype(jnp.float32)          # (1, d) — read once per tile
    scale = scale_ref[...].astype(jnp.float32)  # (1, d) — read once per tile

    def layer_body(_, acc):
        # Residual linear stand-in for the (unspecified) injected encoder layer.
        # Same weights on every iteration — matches `[layer for _ in range(N)]`
        # which aliases ONE layer object N times.
        return acc + jnp.dot(acc, w, preferred_element_type=jnp.float32) + b

    x = jax.lax.fori_loop(0, N_LAYERS, layer_body, x, unroll=True)

    # RMSNorm epilogue: f32 statistics, rsqrt on the EUP (free bundle slot).
    ms = jnp.mean(x * x, axis=-1, keepdims=True)
    inv = jax.lax.rsqrt(ms + EPS)
    o_ref[...] = (x * inv * scale).astype(o_ref.dtype)


# ----------------------------- wrapper ---------------------------------------

def encoder_forward(x, mask, params, *, tm=512):
    """Mirrors Encoder.forward: apply the SAME layer object N times, then RMSNorm."""
    # TODO(synk): the encoder layer is injected at construction in the PyTorch
    # module and its internals are unspecified; a shared residual Linear
    # (identical weights for all N iterations) stands in for it, and `mask`
    # consumption is layer-specific so the stand-in ignores it.
    b_, s_, d_ = x.shape
    rows = b_ * s_
    x2d = x.reshape(rows, d_)

    # Effective row tile: large (512) when there is enough work, clamped and
    # sublane-aligned (multiple of 8) for tiny inputs.  Ragged tail handled by
    # zero-padding; padded rows are sliced off after the call (padded rows are
    # independent, so they never pollute real outputs).
    tm_eff = min(tm, _round_up(rows, 8))
    rows_p = _round_up(rows, tm_eff)
    if rows_p != rows:
        x2d = jnp.pad(x2d, ((0, rows_p - rows), (0, 0)))

    grid = (rows_p // tm_eff,)

    out2d = pl.pallas_call(
        _encoder_kernel,
        out_shape=jax.ShapeDtypeStruct((rows_p, d_), x.dtype),
        grid_spec=pltpu.PrefetchScalarGridSpec(
            num_scalar_prefetch=0,
            grid=grid,
            in_specs=[
                pl.BlockSpec((tm_eff, d_), lambda i: (i, 0)),  # activation tile
                pl.BlockSpec((d_, d_), lambda i: (0, 0)),      # shared weight (VMEM-resident)
                pl.BlockSpec((1, d_), lambda i: (0, 0)),       # shared bias
                pl.BlockSpec((1, d_), lambda i: (0, 0)),       # RMSNorm scale
            ],
            out_specs=pl.BlockSpec((tm_eff, d_), lambda i: (i, 0)),
        ),
        compiler_params=pltpu.CompilerParams(
            dimension_semantics=("parallel",)),
        cost_estimate=pl.CostEstimate(
            flops=2 * N_LAYERS * rows_p * d_ * d_,
            transcendentals=rows_p,
            bytes_accessed=(2 * rows_p * d_ + d_ * d_ + 2 * d_) * x.dtype.itemsize,
        ),
    )(x2d, params["w"], params["b"], params["scale"])

    return out2d[:rows].reshape(b_, s_, d_)


# ----------------------------- reference -------------------------------------

def encoder_reference(x, mask, params):
    b_, s_, d_ = x.shape
    x2d = x.reshape(b_ * s_, d_)
    for _ in range(N_LAYERS):
        x2d = x2d + x2d @ params["w"] + params["b"]
    ms = jnp.mean(x2d * x2d, axis=-1, keepdims=True)
    x2d = x2d / jnp.sqrt(ms + EPS) * params["scale"]
    return x2d.reshape(b_, s_, d_)


# ----------------------------- main ------------------------------------------

if __name__ == "__main__":
    key = jax.random.PRNGKey(0)
    kx, kw, kb = jax.random.split(key, 3)

    B, S, D = 2, 8, D_MODEL
    x = jax.random.normal(kx, (B, S, D), dtype=jnp.float32)
    mask = jnp.ones((B, 1, S, S), dtype=jnp.float32)  # attention-style mask (unused by stand-in layer)

    params = {
        # RMSNorm scale initialized to ones, exactly as nn.Parameter(torch.ones(d_model))
        "scale": jnp.ones((1, D), dtype=jnp.float32),
        # deterministic stand-in layer weights (shared across all N layer applications)
        "w": 0.02 * jax.random.normal(kw, (D, D), dtype=jnp.float32),
        "b": 0.01 * jax.random.normal(kb, (1, D), dtype=jnp.float32),
    }

    out = encoder_forward(x, mask, params)
    out = jax.block_until_ready(out)

    ref = encoder_reference(x, mask, params)
    assert out.shape == (B, S, D)
    assert jnp.allclose(out, ref, atol=1e-4, rtol=1e-4), "mismatch vs reference"

    print("KERNEL_OK")
</pallas_src>

<mosaic_0001>
module attributes {stable_mosaic.version = 11 : i64} {
  func.func @_encoder_kernel(%arg0: i32, %arg1: memref<16x128xf32, #tpu.memory_space<vmem>>, %arg2: memref<128x128xf32, #tpu.memory_space<vmem>>, %arg3: memref<1x128xf32, #tpu.memory_space<vmem>>, %arg4: memref<1x128xf32, #tpu.memory_space<vmem>>, %arg5: memref<16x128xf32, #tpu.memory_space<vmem>>) attributes {dimension_semantics = [#tpu.dimension_semantics<parallel>], iteration_bounds = array<i64: 1>, scalar_prefetch = 0 : i64, scratch_operands = 0 : i64, tpu.core_type = #tpu.core_type<tc>, window_params = [{transform_indices = @transform_0, window_bounds = array<i64: 16, 128>}, {pipeline_mode = #tpu.pipeline_mode<synchronous>, transform_indices = @transform_1, window_bounds = array<i64: 128, 128>}, {pipeline_mode = #tpu.pipeline_mode<synchronous>, transform_indices = @transform_2, window_bounds = array<i64: 1, 128>}, {pipeline_mode = #tpu.pipeline_mode<synchronous>, transform_indices = @transform_3, window_bounds = array<i64: 1, 128>}, {transform_indices = @transform_4, window_bounds = array<i64: 16, 128>}]} {
    %c0 = arith.constant 0 : index
    %c0_0 = arith.constant 0 : index
    %0 = vector.load %arg1[%c0, %c0_0] : memref<16x128xf32, #tpu.memory_space<vmem>>, vector<16x128xf32>
    %c0_1 = arith.constant 0 : index
    %c0_2 = arith.constant 0 : index
    %1 = vector.load %arg2[%c0_1, %c0_2] : memref<128x128xf32, #tpu.memory_space<vmem>>, vector<128x128xf32>
    %c0_3 = arith.constant 0 : index
    %c0_4 = arith.constant 0 : index
    %2 = vector.load %arg3[%c0_3, %c0_4] : memref<1x128xf32, #tpu.memory_space<vmem>>, vector<1x128xf32>
    %c0_5 = arith.constant 0 : index
    %c0_6 = arith.constant 0 : index
    %3 = vector.load %arg4[%c0_5, %c0_6] : memref<1x128xf32, #tpu.memory_space<vmem>>, vector<1x128xf32>
    %c0_i32 = arith.constant 0 : i32
    %cst = arith.constant dense<0.000000e+00> : vector<16x128xf32>
    %4 = tpu.matmul %0, %1, %cst {dimension_numbers = #tpu.dot_dimension_numbers<[1], [0], [0], [1], [0, 0, 1, 1], [], []>} : vector<16x128xf32>, vector<128x128xf32>, vector<16x128xf32> -> vector<16x128xf32>
    %5 = arith.addf %0, %4 : vector<16x128xf32>
    %6 = vector.broadcast %2 : vector<1x128xf32> to vector<16x128xf32>
    %7 = arith.addf %5, %6 : vector<16x128xf32>
    %c1_i32 = arith.constant 1 : i32
    %cst_7 = arith.constant dense<0.000000e+00> : vector<16x128xf32>
    %8 = tpu.matmul %7, %1, %cst_7 {dimension_numbers = #tpu.dot_dimension_numbers<[1], [0], [0], [1], [0, 0, 1, 1], [], []>} : vector<16x128xf32>, vector<128x128xf32>, vector<16x128xf32> -> vector<16x128xf32>
    %9 = arith.addf %7, %8 : vector<16x128xf32>
    %10 = vector.broadcast %2 : vector<1x128xf32> to vector<16x128xf32>
    %11 = arith.addf %9, %10 : vector<16x128xf32>
    %12 = arith.mulf %11, %11 : vector<16x128xf32>
    %cst_8 = arith.constant dense<0.000000e+00> : vector<16xf32>
    %13 = vector.multi_reduction <add>, %12, %cst_8 [1] : vector<16x128xf32> to vector<16xf32>
    %14 = vector.shape_cast %13 : vector<16xf32> to vector<16x1xf32>
    %cst_9 = arith.constant 1.280000e+02 : f32
    %15 = vector.broadcast %cst_9 : f32 to vector<16x1xf32>
    %16 = arith.divf %14, %15 : vector<16x1xf32>
    %cst_10 = arith.constant 9.99999997E-7 : f32
    %17 = vector.broadcast %cst_10 : f32 to vector<16x1xf32>
    %18 = arith.addf %16, %17 : vector<16x1xf32>
    %19 = math.rsqrt %18 : vector<16x1xf32>
    %20 = vector.broadcast %19 : vector<16x1xf32> to vector<16x128xf32>
    %21 = arith.mulf %11, %20 : vector<16x128xf32>
    %22 = vector.broadcast %3 : vector<1x128xf32> to vector<16x128xf32>
    %23 = arith.mulf %21, %22 : vector<16x128xf32>
    %c0_11 = arith.constant 0 : index
    %c0_12 = arith.constant 0 : index
    %24 = vector.load %arg5[%c0_11, %c0_12] : memref<16x128xf32, #tpu.memory_space<vmem>>, vector<16x128xf32>
    tpu.vector_store %arg5[%c0_11, %c0_12], %23 {strides = array<i32>} : memref<16x128xf32, #tpu.memory_space<vmem>>, vector<16x128xf32>,
    return
  }
  func.func @transform_0(%arg0: i32) -> (i32, i32) {
    %c0_i32 = arith.constant 0 : i32
    %c0_i32_0 = arith.constant 0 : i32
    return %arg0, %c0_i32 : i32, i32
  }
  func.func @transform_1(%arg0: i32) -> (i32, i32) {
    %c0_i32 = arith.constant 0 : i32
    %c0_i32_0 = arith.constant 0 : i32
    %c0_i32_1 = arith.constant 0 : i32
    return %c0_i32, %c0_i32_0 : i32, i32
  }
  func.func @transform_2(%arg0: i32) -> (i32, i32) {
    %c0_i32 = arith.constant 0 : i32
    %c0_i32_0 = arith.constant 0 : i32
    %c0_i32_1 = arith.constant 0 : i32
    return %c0_i32, %c0_i32_0 : i32, i32
  }
  func.func @transform_3(%arg0: i32) -> (i32, i32) {
    %c0_i32 = arith.constant 0 : i32
    %c0_i32_0 = arith.constant 0 : i32
    %c0_i32_1 = arith.constant 0 : i32
    return %c0_i32, %c0_i32_0 : i32, i32
  }
  func.func @transform_4(%arg0: i32) -> (i32, i32) {
    %c0_i32 = arith.constant 0 : i32
    %c0_i32_0 = arith.constant 0 : i32
    return %arg0, %c0_i32 : i32, i32
  }
}

</mosaic_0001>

<bundles_post_ra>
// kernel: tpu_custom_call.1
= control target key start
LH: loop header
LB: loop body
LE: loop exit
PB: predicated region body
PF: predicated region fallthrough
CT: control target
= control target key end

     0   :  { %9 = vsyncpa [#allocation3], 0  ;;  %s372_s0 = inlined_call_operand.hbm [shape: f32[16,128], index: 0, kind: input, shape index: {}]   ;;  %s373_s1 = inlined_call_operand.hbm [shape: f32[128,128], index: 1, kind: input, shape index: {}]   ;;  %s374_s2 = inlined_call_operand.vmem [shape: f32[1,128], index: 2, kind: input, shape index: {}]   ;;  %s375_s3 = inlined_call_operand.vmem [shape: f32[1,128], index: 3, kind: input, shape index: {}]   ;;  %s376_s4 = inlined_call_operand.hbm [shape: f32[16,128], index: 4, kind: output, shape index: {}]  }
   0x1   :  { %10 = vsyncpa [#allocation6], 0 }
   0x2   :  { %11 = vsyncpa [#allocation4], 0  ;;  %s16_s17 = sshll.u32 %s372_s0, 4  ;;  %s317_s18 = smov [#allocation2]   ;;  %s17_s17 = int_to_ptr.hbm [resolvable:$true] %s16_s17 }
   0x3   :  { %s18_s19 = sshll.u32 %s317_s18, 4  ;;  %s29_s22 = sshll.u32 %s373_s1, 4  ;;  %s19_s19 = int_to_ptr.vmem [resolvable:$true] %s18_s19  ;;  %s30_s22 = int_to_ptr.hbm [resolvable:$true] %s29_s22 }
   0x4   :  { %s318_s23 = smov 128   ;;  %s319_s24 = smov 8  }
   0x5   :  { %24 = dma.hbm_to_vmem [thread:$0]  %s17_s17, 256, %s19_s19, [#allocation3], %s318_s23, %s318_s23, %s319_s24  }
   0x6   :  { %s320_s25 = smov [#allocation5]  }
   0x7   :  { %s31_s26 = sshll.u32 %s320_s25, 4  ;;  %s32_s26 = int_to_ptr.vmem [resolvable:$true] %s31_s26 }
   0x8   :  { %37 = dma.hbm_to_vmem [thread:$0]  %s30_s22, 2048, %s32_s26, [#allocation6], %s318_s23, %s318_s23, %s319_s24  }
   0x9   :  { %311 = dma.done.wait [#allocation3], 256  }
   0xa   :  { %312 = vsyncadd [#allocation3], 4294967040 }
   0xb   :  { %313 = dma.done.wait [#allocation6], 2048  }
   0xc   :  { %314 = vsyncadd [#allocation6], 4294965248  ;;  %v67_v0 = vld [vmem:[#allocation5 + $0x78] sm:$0xff]  ;;  %v66_v1 = vld [vmem:[#allocation5 + $0x70] sm:$0xff]  ;;  %v321_v33 = vmov 128.0   ;;  %s322_s28 = smov [#allocation7]  }
   0xd   :  { %70 = vmatpush.msra.mxu0 %v67_v0  ;;  %193 = vmatpush.msra.mxu2 %v67_v0  ;;  %v65_v2 = vld [vmem:[#allocation5 + $0x68] sm:$0xff]  ;;  %v64_v3 = vld [vmem:[#allocation5 + $0x60] sm:$0xff]  ;;  %v63_v4 = vld [vmem:[#allocation5 + $0x58] sm:$0xff]  ;;  %233 = vrcp.f32 %v321_v33  ;;  %s177_s29 = sshll.u32 %s322_s28, 4  ;;  %s178_s29 = int_to_ptr.vmem [resolvable:$true] %s177_s29 }
   0xe   :  { %100 = vmatpush.msra.mxu1 %v67_v0  ;;  %209 = vmatpush.msra.mxu3 %v67_v0  ;;  %v62_v5 = vld [vmem:[#allocation5 + $0x50] sm:$0xff]  ;;  %v61_v6 = vld [vmem:[#allocation5 + $0x48] sm:$0xff]  ;;  %v60_v7 = vld [vmem:[#allocation5 + $0x40] sm:$0xff] }
   0xf   :  { %71 = vmatpush.msra.mxu0 %v66_v1  ;;  %194 = vmatpush.msra.mxu2 %v66_v1  ;;  %v59_v8 = vld [vmem:[#allocation5 + $0x38] sm:$0xff]  ;;  %v58_v9 = vld [vmem:[#allocation5 + $0x30] sm:$0xff]  ;;  %v57_v10 = vld [vmem:[#allocation5 + $0x28] sm:$0xff] }
  0x10   :  { %101 = vmatpush.msra.mxu1 %v66_v1  ;;  %210 = vmatpush.msra.mxu3 %v66_v1  ;;  %v56_v11 = vld [vmem:[#allocation5 + $0x20] sm:$0xff]  ;;  %v55_v12 = vld [vmem:[#allocation5 + $0x18] sm:$0xff]  ;;  %v54_v13 = vld [vmem:[#allocation5 + $0x10] sm:$0xff] }
  0x11   :  { %72 = vmatpush.msra.mxu0 %v65_v2  ;;  %195 = vmatpush.msra.mxu2 %v65_v2  ;;  %v53_v14 = vld [vmem:[#allocation5 + $0x8] sm:$0xff]  ;;  %v52_v15 = vld [vmem:[#allocation5] sm:$0xff]  ;;  %v50_v16 = vld [vmem:[#allocation2] sm:$0xff] }
  0x12   :  { %102 = vmatpush.msra.mxu1 %v65_v2  ;;  %211 = vmatpush.msra.mxu3 %v65_v2  ;;  %v51_v17 = vld [vmem:[#allocation2 + $0x8] sm:$0xff]  ;;  %v231_v18 = vld [vmem:[%s374_s2] ss:$0 sm:$0xff] }
  0x13   :  { %73 = vmatpush.msra.mxu0 %v64_v3  ;;  %196 = vmatpush.msra.mxu2 %v64_v3  ;;  %v234_v34 = vpop.eup %233  ;;  %v232_v52 = vld [vmem:[%s375_s3] ss:$0 sm:$0xff]  ;;  %s179_s3 = sshll.u32 %s376_s4, 4  ;;  %s180_s3 = int_to_ptr.hbm [resolvable:$true] %s179_s3 }
  0x14   :  { %103 = vmatpush.msra.mxu1 %v64_v3  ;;  %212 = vmatpush.msra.mxu3 %v64_v3  ;;  %v134_v35 = vmul.f32 128.0, %v234_v34  ;;  %vm138_vm0 = vweird.f32 %v234_v34 }
  0x15   :  { %74 = vmatpush.msra.mxu0 %v63_v4  ;;  %197 = vmatpush.msra.mxu2 %v63_v4 }
  0x16   :  { %104 = vmatpush.msra.mxu1 %v63_v4  ;;  %213 = vmatpush.msra.mxu3 %v63_v4  ;;  %v135_v36 = vsub.f32 1.0, %v134_v35 }
  0x17   :  { %75 = vmatpush.msra.mxu0 %v62_v5  ;;  %198 = vmatpush.msra.mxu2 %v62_v5 }
  0x18   :  { %105 = vmatpush.msra.mxu1 %v62_v5  ;;  %214 = vmatpush.msra.mxu3 %v62_v5  ;;  %v136_v37 = vmul.f32 %v234_v34, %v135_v36 }
  0x19   :  { %76 = vmatpush.msra.mxu0 %v61_v6  ;;  %199 = vmatpush.msra.mxu2 %v61_v6 }
  0x1a   :  { %106 = vmatpush.msra.mxu1 %v61_v6  ;;  %215 = vmatpush.msra.mxu3 %v61_v6  ;;  %v137_v38 = vadd.f32 %v234_v34, %v136_v37 }
  0x1b   :  { %77 = vmatpush.msra.mxu0 %v60_v7  ;;  %200 = vmatpush.msra.mxu2 %v60_v7 }
  0x1c   :  { %107 = vmatpush.msra.mxu1 %v60_v7  ;;  %216 = vmatpush.msra.mxu3 %v60_v7  ;;  %v139_v39 = vsel %vm138_vm0, %v234_v34, %v137_v38 }
  0x1d   :  { %78 = vmatpush.msra.mxu0 %v59_v8  ;;  %201 = vmatpush.msra.mxu2 %v59_v8 }
  0x1e   :  { %108 = vmatpush.msra.mxu1 %v59_v8  ;;  %217 = vmatpush.msra.mxu3 %v59_v8 }
  0x1f   :  { %79 = vmatpush.msra.mxu0 %v58_v9  ;;  %202 = vmatpush.msra.mxu2 %v58_v9 }
  0x20   :  { %109 = vmatpush.msra.mxu1 %v58_v9  ;;  %218 = vmatpush.msra.mxu3 %v58_v9 }
  0x21   :  { %80 = vmatpush.msra.mxu0 %v57_v10  ;;  %203 = vmatpush.msra.mxu2 %v57_v10 }
  0x22   :  { %110 = vmatpush.msra.mxu1 %v57_v10  ;;  %219 = vmatpush.msra.mxu3 %v57_v10 }
  0x23   :  { %81 = vmatpush.msra.mxu0 %v56_v11  ;;  %204 = vmatpush.msra.mxu2 %v56_v11 }
  0x24   :  { %111 = vmatpush.msra.mxu1 %v56_v11  ;;  %220 = vmatpush.msra.mxu3 %v56_v11 }
  0x25   :  { %82 = vmatpush.msra.mxu0 %v55_v12  ;;  %205 = vmatpush.msra.mxu2 %v55_v12 }
  0x26   :  { %112 = vmatpush.msra.mxu1 %v55_v12  ;;  %221 = vmatpush.msra.mxu3 %v55_v12 }
  0x27   :  { %83 = vmatpush.msra.mxu0 %v54_v13  ;;  %206 = vmatpush.msra.mxu2 %v54_v13 }
  0x28   :  { %113 = vmatpush.msra.mxu1 %v54_v13  ;;  %222 = vmatpush.msra.mxu3 %v54_v13 }
  0x29   :  { %84 = vmatpush.msra.mxu0 %v53_v14  ;;  %207 = vmatpush.msra.mxu2 %v53_v14 }
  0x2a   :  { %114 = vmatpush.msra.mxu1 %v53_v14  ;;  %223 = vmatpush.msra.mxu3 %v53_v14 }
  0x2b   :  { %85 = vmatpush.msra.mxu0 %v52_v15  ;;  %208 = vmatpush.msra.mxu2 %v52_v15 }
  0x2c   :  { %86 = vmatmul.f32.vlgmr.msra.gmra.mxu0 %v50_v16  ;;  %89 = vmatmul.f32.vlgmr.msra.gmra.mxu2 %v51_v17 }
  0x2d   :  { %115 = vmatpush.msra.mxu1 %v52_v15  ;;  %224 = vmatpush.msra.mxu3 %v52_v15 }
  0xa9   :  { %v87_v19 = vpop.f32.mrf.mxu0 }
  0xaa   :  { %v93_v20 = vadd.f32 %v87_v19, %v50_v16 }
  0xac   :  { %v98_v21 = vadd.f32 %v231_v18, %v93_v20 }
  0xae   :  { %116 = vmatmul.f32.vlgmr.msra.gmra.mxu1 %v98_v21 }
  0xaf   :  { %v90_v22 = vpop.f32.mrf.mxu2 }
  0xb0   :  { %v94_v23 = vadd.f32 %v90_v22, %v51_v17 }
  0xb2   :  { %v99_v24 = vadd.f32 %v231_v18, %v94_v23 }
  0xb4   :  { %119 = vmatmul.f32.vlgmr.msra.gmra.mxu3 %v99_v24 }
 0x12b   :  { %v117_v25 = vpop.f32.mrf.mxu1 }
 0x12c   :  { %v123_v26 = vadd.f32 %v117_v25, %v98_v21 }
 0x12e   :  { %v125_v27 = vadd.f32 %v231_v18, %v123_v26 }
 0x130   :  { %v127_v28 = vmul.f32 %v125_v27, %v125_v27 }
 0x132   :  { %129 = vadd.xlane.f32.xlu0 %v127_v28 }
 0x137   :  { %v120_v29 = vpop.f32.mrf.mxu3 }
 0x138   :  { %v124_v30 = vadd.f32 %v120_v29, %v99_v24 }
 0x13a   :  { %v126_v31 = vadd.f32 %v231_v18, %v124_v30 }
 0x13c   :  { %v128_v32 = vmul.f32 %v126_v31, %v126_v31 }
 0x13e   :  { %131 = vadd.xlane.f32.xlu0 %v128_v32 }
 0x1a5   :  { %v130_v40 = vpop.xlane.xlu0 %129 }
 0x1a6   :  { %v140_v41 = vmul.f32 %v139_v39, %v130_v40 }
 0x1a8   :  { %v142_v42 = vadd.f32 1e-06, %v140_v41 }
 0x1aa   :  { %235 = vrsqrt.f32 %v142_v42  ;;  %vm150_vm2 = vweird.f32 %v142_v42 }
 0x1b0   :  { %v236_v43 = vpop.eup %235 }
 0x1b1   :  { %v145_v44 = vmul.f32 %v236_v43, %v142_v42  ;;  %v132_v45 = vpop.xlane.xlu0 %131  ;;  %vm151_vm1 = vweird.f32 %v236_v43 }
 0x1b2   :  { %v141_v46 = vmul.f32 %v139_v39, %v132_v45  ;;  %vm152_vm3 = vmor %vm150_vm2, %vm151_vm1 }
 0x1b3   :  { %v146_v47 = vmul.f32 %v236_v43, %v145_v44 }
 0x1b4   :  { %v143_v48 = vadd.f32 1e-06, %v141_v46 }
 0x1b5   :  { %v147_v49 = vmul.f32 0.5, %v146_v47 }
 0x1b6   :  { %237 = vrsqrt.f32 %v143_v48  ;;  %vm160_vm5 = vweird.f32 %v143_v48 }
 0x1b7   :  { %v148_v50 = vsub.f32 1.5, %v147_v49 }
 0x1b9   :  { %v149_v51 = vmul.f32 %v236_v43, %v148_v50 }
 0x1bb   :  { %v153_v53 = vsel %vm152_vm3, %v236_v43, %v149_v51 }
 0x1bc   :  { %v238_v54 = vpop.eup %237  ;;  %v164_v55 = vmul.f32 %v153_v53, %v125_v27 }
 0x1bd   :  { %v155_v56 = vmul.f32 %v238_v54, %v143_v48  ;;  %vm161_vm4 = vweird.f32 %v238_v54 }
 0x1be   :  { %v169_v57 = vmul.f32 %v232_v52, %v164_v55  ;;  %vm162_vm6 = vmor %vm160_vm5, %vm161_vm4 }
 0x1bf   :  { %v156_v58 = vmul.f32 %v238_v54, %v155_v56 }
 0x1c0   :  { %171 = vst [vmem:[#allocation7] sm:$0xff] %v169_v57 }
 0x1c1   :  { %v157_v59 = vmul.f32 0.5, %v156_v58 }
 0x1c3   :  { %v158_v60 = vsub.f32 1.5, %v157_v59 }
 0x1c5   :  { %v159_v61 = vmul.f32 %v238_v54, %v158_v60 }
 0x1c7   :  { %v163_v62 = vsel %vm162_vm6, %v238_v54, %v159_v61 }
 0x1c8   :  { %v165_v63 = vmul.f32 %v163_v62, %v126_v31 }
 0x1ca   :  { %v170_v0 = vmul.f32 %v232_v52, %v165_v63 }
 0x1cc   :  { %172 = vst [vmem:[#allocation7 + $0x8] sm:$0xff] %v170_v0 }
 0x1cd   :  { %185 = dma.vmem_to_hbm [thread:$0]  %s178_s29, 256, %s180_s3, [#allocation4], %s318_s23, %s318_s23, %s319_s24  }
 0x1ce   :  { %315 = dma.done.wait [#allocation4], 256  }
 0x1cf   :  { %316 = vsyncadd [#allocation4], 4294967040 }
 0x1d0   :  { %190 = vsyncpa [#allocation3], 1 }
 0x1d1   :  { %191 = vsyncpa [#allocation6], 1 }
 0x1d2   :  { %192 = vsyncpa [#allocation4], 1 }

</bundles_post_ra>
